<compile_context>
chip_gen: v7x
topology: tpu7x:2x2x1
jax: 0.10.0
libtpu: 0.0.40
codegen_flags: <defaults>
</compile_context>

<pallas_src>
import math

import jax
import jax.numpy as jnp
from jax import lax
from jax.experimental import pallas as pl
from jax.experimental.pallas import tpu as pltpu

_HALF_LOG_2PI = 0.5 * math.log(2.0 * math.pi)
_SOFTPLUS_CUTOFF = 20.0  # softplus(x) ~= x for x > 20 in f32


def _stable_softplus(x):
    # log1p(exp(x)) without overflow: for x > cutoff return x directly.
    return jnp.where(x > _SOFTPLUS_CUTOFF, x,
                     jnp.log1p(jnp.exp(jnp.minimum(x, _SOFTPLUS_CUTOFF))))


# ---------------------------------------------------------------------------
# Fused kernel: reparameterized sampling + variational log-prob + linear forward
# ---------------------------------------------------------------------------
def _vi_fused_kernel(x_ref, mu_w_ref, rho_w_ref, eps_w_ref,
                     mu_b_ref, rho_b_ref, eps_b_ref,
                     y_ref, w_out_ref, b_out_ref, logq_ref):
    mu_w = mu_w_ref[...]
    mu_b = mu_b_ref[...]
    eps_w = eps_w_ref[...]
    eps_b = eps_b_ref[...]

    sig_w = _stable_softplus(rho_w_ref[...])
    sig_b = _stable_softplus(rho_b_ref[...])

    # Reparameterized sample (particle 0).
    w = eps_w * sig_w + mu_w
    b = eps_b * sig_b + mu_b
    w_out_ref[...] = w
    b_out_ref[...] = b

    # Normal(mu, sigma).log_prob(sampled) with (sampled - mu)/sigma == eps exactly.
    lp_w = -0.5 * eps_w * eps_w - jnp.log(sig_w) - _HALF_LOG_2PI
    lp_b = -0.5 * eps_b * eps_b - jnp.log(sig_b) - _HALF_LOG_2PI
    logq_ref[0, 0] = jnp.sum(lp_w) + jnp.sum(lp_b)

    # y = x @ W.T + b  — contract in_features axis of both operands on the MXU
    # (no explicit transpose).
    y = lax.dot_general(x_ref[...], w,
                        dimension_numbers=(((1,), (1,)), ((), ())),
                        preferred_element_type=jnp.float32)
    y_ref[...] = (y + b).astype(y_ref.dtype)


def variational_sample_and_forward(x, mu_w, rho_w, eps_w, mu_b2d, rho_b2d, eps_b2d):
    """One fused call: sample parameters, compute log_v_post, and run the forward pass.

    Returns (y, w_sampled, b_sampled_2d, log_v_post_1x1).
    """
    batch, in_f = x.shape
    out_f = mu_w.shape[0]
    full = lambda shape: pl.BlockSpec(shape, lambda: (0, 0))
    return pl.pallas_call(
        _vi_fused_kernel,
        out_shape=(
            jax.ShapeDtypeStruct((batch, out_f), jnp.float32),   # y = forward(x)
            jax.ShapeDtypeStruct((out_f, in_f), jnp.float32),    # sampled weight
            jax.ShapeDtypeStruct((1, out_f), jnp.float32),       # sampled bias (2-D slab)
            jax.ShapeDtypeStruct((1, 1), jnp.float32),           # log_v_post (1 particle)
        ),
        in_specs=[full((batch, in_f)),
                  full((out_f, in_f)), full((out_f, in_f)), full((out_f, in_f)),
                  full((1, out_f)), full((1, out_f)), full((1, out_f))],
        out_specs=(full((batch, out_f)),
                   full((out_f, in_f)),
                   full((1, out_f)),
                   pl.BlockSpec(memory_space=pltpu.SMEM)),
    )(x, mu_w, rho_w, eps_w, mu_b2d, rho_b2d, eps_b2d)


if __name__ == "__main__":
    # Small shapes: batch=8, in_features=32, out_features=16, n_particles=1.
    batch, in_f, out_f = 8, 32, 16
    initial_rho = -5.0

    key = jax.random.PRNGKey(0)
    k_mu_w, k_mu_b, k_eps_w, k_eps_b, k_x = jax.random.split(key, 5)

    # Deterministic "checkpoint-free" parameter init (mirrors module __init__).
    mu_w = 0.1 * jax.random.normal(k_mu_w, (out_f, in_f), dtype=jnp.float32)
    mu_b = 0.1 * jax.random.normal(k_mu_b, (out_f,), dtype=jnp.float32)
    rho_w = jnp.zeros_like(mu_w) + initial_rho
    rho_b = jnp.zeros_like(mu_b) + initial_rho

    # Reparameterization noise for one particle (particle_idx = 0).
    eps_w = jax.random.normal(k_eps_w, (out_f, in_f), dtype=jnp.float32)
    eps_b = jax.random.normal(k_eps_b, (out_f,), dtype=jnp.float32)

    # 2-D slabs for bias-shaped tensors (layout glue only).
    mu_b2d = mu_b.reshape(1, out_f)
    rho_b2d = rho_b.reshape(1, out_f)
    eps_b2d = eps_b.reshape(1, out_f)

    x = jax.random.normal(k_x, (batch, in_f), dtype=jnp.float32)

    # Fused: sample_parameters() + forward()
    y, w_sampled, b_sampled2d, log_v_post = variational_sample_and_forward(
        x, mu_w, rho_w, eps_w, mu_b2d, rho_b2d, eps_b2d)

    jax.block_until_ready((y, w_sampled, b_sampled2d, log_v_post))

    # Reference check in plain JAX (mirrors the PyTorch module).
    sig_w = jnp.log1p(jnp.exp(rho_w))
    sig_b = jnp.log1p(jnp.exp(rho_b))
    w_ref = eps_w * sig_w + mu_w
    b_ref = eps_b * sig_b + mu_b
    lq_ref = (jnp.sum(-0.5 * ((w_ref - mu_w) / sig_w) ** 2 - jnp.log(sig_w) - _HALF_LOG_2PI)
              + jnp.sum(-0.5 * ((b_ref - mu_b) / sig_b) ** 2 - jnp.log(sig_b) - _HALF_LOG_2PI))
    y_ref = x @ w_ref.T + b_ref

    assert jnp.allclose(w_sampled, w_ref, atol=1e-5, rtol=1e-5)
    assert jnp.allclose(b_sampled2d[0], b_ref, atol=1e-5, rtol=1e-5)
    assert jnp.allclose(log_v_post[0, 0], lq_ref, atol=1e-3, rtol=1e-5)
    assert jnp.allclose(y, y_ref, atol=1e-4, rtol=1e-4)

    print("KERNEL_OK")
</pallas_src>

<mosaic_0001>
module attributes {stable_mosaic.version = 11 : i64} {
  func.func @_vi_fused_kernel(%arg0: memref<8x32xf32, #tpu.memory_space<vmem>>, %arg1: memref<16x32xf32, #tpu.memory_space<vmem>>, %arg2: memref<16x32xf32, #tpu.memory_space<vmem>>, %arg3: memref<16x32xf32, #tpu.memory_space<vmem>>, %arg4: memref<1x16xf32, #tpu.memory_space<vmem>>, %arg5: memref<1x16xf32, #tpu.memory_space<vmem>>, %arg6: memref<1x16xf32, #tpu.memory_space<vmem>>, %arg7: memref<8x16xf32, #tpu.memory_space<vmem>>, %arg8: memref<16x32xf32, #tpu.memory_space<vmem>>, %arg9: memref<1x16xf32, #tpu.memory_space<vmem>>, %arg10: memref<1x1xf32, #tpu.memory_space<smem>>) attributes {dimension_semantics = [], scalar_prefetch = 0 : i64, scratch_operands = 0 : i64, tpu.core_type = #tpu.core_type<tc>} {
    %c0 = arith.constant 0 : index
    %c0_0 = arith.constant 0 : index
    %0 = vector.load %arg1[%c0, %c0_0] : memref<16x32xf32, #tpu.memory_space<vmem>>, vector<16x32xf32>
    %c0_1 = arith.constant 0 : index
    %c0_2 = arith.constant 0 : index
    %1 = vector.load %arg4[%c0_1, %c0_2] : memref<1x16xf32, #tpu.memory_space<vmem>>, vector<1x16xf32>
    %c0_3 = arith.constant 0 : index
    %c0_4 = arith.constant 0 : index
    %2 = vector.load %arg3[%c0_3, %c0_4] : memref<16x32xf32, #tpu.memory_space<vmem>>, vector<16x32xf32>
    %c0_5 = arith.constant 0 : index
    %c0_6 = arith.constant 0 : index
    %3 = vector.load %arg6[%c0_5, %c0_6] : memref<1x16xf32, #tpu.memory_space<vmem>>, vector<1x16xf32>
    %c0_7 = arith.constant 0 : index
    %c0_8 = arith.constant 0 : index
    %4 = vector.load %arg2[%c0_7, %c0_8] : memref<16x32xf32, #tpu.memory_space<vmem>>, vector<16x32xf32>
    %cst = arith.constant 2.000000e+01 : f32
    %5 = vector.broadcast %cst : f32 to vector<16x32xf32>
    %6 = arith.cmpf ogt, %4, %5 : vector<16x32xf32>
    %cst_9 = arith.constant 2.000000e+01 : f32
    %7 = vector.broadcast %cst_9 : f32 to vector<16x32xf32>
    %8 = arith.minimumf %4, %7 : vector<16x32xf32>
    %9 = math.exp %8 : vector<16x32xf32>
    %10 = math.log1p %9 : vector<16x32xf32>
    %11 = arith.select %6, %4, %10 : vector<16x32xi1>, vector<16x32xf32>
    %c0_10 = arith.constant 0 : index
    %c0_11 = arith.constant 0 : index
    %12 = vector.load %arg5[%c0_10, %c0_11] : memref<1x16xf32, #tpu.memory_space<vmem>>, vector<1x16xf32>
    %cst_12 = arith.constant 2.000000e+01 : f32
    %13 = vector.broadcast %cst_12 : f32 to vector<1x16xf32>
    %14 = arith.cmpf ogt, %12, %13 : vector<1x16xf32>
    %cst_13 = arith.constant 2.000000e+01 : f32
    %15 = vector.broadcast %cst_13 : f32 to vector<1x16xf32>
    %16 = arith.minimumf %12, %15 : vector<1x16xf32>
    %17 = math.exp %16 : vector<1x16xf32>
    %18 = math.log1p %17 : vector<1x16xf32>
    %19 = arith.select %14, %12, %18 : vector<1x16xi1>, vector<1x16xf32>
    %20 = arith.mulf %2, %11 : vector<16x32xf32>
    %21 = arith.addf %20, %0 : vector<16x32xf32>
    %22 = arith.mulf %3, %19 : vector<1x16xf32>
    %23 = arith.addf %22, %1 : vector<1x16xf32>
    %c0_14 = arith.constant 0 : index
    %c0_15 = arith.constant 0 : index
    %24 = vector.load %arg8[%c0_14, %c0_15] : memref<16x32xf32, #tpu.memory_space<vmem>>, vector<16x32xf32>
    tpu.vector_store %arg8[%c0_14, %c0_15], %21 {strides = array<i32>} : memref<16x32xf32, #tpu.memory_space<vmem>>, vector<16x32xf32>,
    %c0_16 = arith.constant 0 : index
    %c0_17 = arith.constant 0 : index
    %25 = vector.load %arg9[%c0_16, %c0_17] : memref<1x16xf32, #tpu.memory_space<vmem>>, vector<1x16xf32>
    tpu.vector_store %arg9[%c0_16, %c0_17], %23 {strides = array<i32>} : memref<1x16xf32, #tpu.memory_space<vmem>>, vector<1x16xf32>,
    %cst_18 = arith.constant -5.000000e-01 : f32
    %26 = vector.broadcast %cst_18 : f32 to vector<16x32xf32>
    %27 = arith.mulf %26, %2 : vector<16x32xf32>
    %28 = arith.mulf %27, %2 : vector<16x32xf32>
    %29 = math.log %11 : vector<16x32xf32>
    %30 = arith.subf %28, %29 : vector<16x32xf32>
    %cst_19 = arith.constant 0.918938517 : f32
    %31 = vector.broadcast %cst_19 : f32 to vector<16x32xf32>
    %32 = arith.subf %30, %31 : vector<16x32xf32>
    %cst_20 = arith.constant -5.000000e-01 : f32
    %33 = vector.broadcast %cst_20 : f32 to vector<1x16xf32>
    %34 = arith.mulf %33, %3 : vector<1x16xf32>
    %35 = arith.mulf %34, %3 : vector<1x16xf32>
    %36 = math.log %19 : vector<1x16xf32>
    %37 = arith.subf %35, %36 : vector<1x16xf32>
    %cst_21 = arith.constant 0.918938517 : f32
    %38 = vector.broadcast %cst_21 : f32 to vector<1x16xf32>
    %39 = arith.subf %37, %38 : vector<1x16xf32>
    %40 = vector.shape_cast %32 : vector<16x32xf32> to vector<1x16x32xf32>
    %cst_22 = arith.constant dense<0.000000e+00> : vector<1xf32>
    %41 = vector.multi_reduction <add>, %40, %cst_22 [1, 2] : vector<1x16x32xf32> to vector<1xf32>
    %42 = vector.shape_cast %41 : vector<1xf32> to vector<1x1x1xf32>
    %43 = vector.extract %42[0, 0, 0] : f32 from vector<1x1x1xf32>
    %44 = vector.shape_cast %39 : vector<1x16xf32> to vector<1x1x16xf32>
    %cst_23 = arith.constant dense<0.000000e+00> : vector<1xf32>
    %45 = vector.multi_reduction <add>, %44, %cst_23 [1, 2] : vector<1x1x16xf32> to vector<1xf32>
    %46 = vector.shape_cast %45 : vector<1xf32> to vector<1x1x1xf32>
    %47 = vector.extract %46[0, 0, 0] : f32 from vector<1x1x1xf32>
    %48 = arith.addf %43, %47 : f32
    %c0_24 = arith.constant 0 : index
    %c0_25 = arith.constant 0 : index
    %49 = memref.load %arg10[%c0_24, %c0_25] : memref<1x1xf32, #tpu.memory_space<smem>>
    memref.store %48, %arg10[%c0_24, %c0_25] : memref<1x1xf32, #tpu.memory_space<smem>>
    %c0_26 = arith.constant 0 : index
    %c0_27 = arith.constant 0 : index
    %50 = vector.load %arg0[%c0_26, %c0_27] : memref<8x32xf32, #tpu.memory_space<vmem>>, vector<8x32xf32>
    %cst_28 = arith.constant dense<0.000000e+00> : vector<8x16xf32>
    %51 = tpu.matmul %50, %21, %cst_28 {dimension_numbers = #tpu.dot_dimension_numbers<[1], [1], [0], [0], [0, 0, 1, 0], [], []>} : vector<8x32xf32>, vector<16x32xf32>, vector<8x16xf32> -> vector<8x16xf32>
    %52 = vector.broadcast %23 : vector<1x16xf32> to vector<8x16xf32>
    %53 = arith.addf %51, %52 : vector<8x16xf32>
    %c0_29 = arith.constant 0 : index
    %c0_30 = arith.constant 0 : index
    %54 = vector.load %arg7[%c0_29, %c0_30] : memref<8x16xf32, #tpu.memory_space<vmem>>, vector<8x16xf32>
    tpu.vector_store %arg7[%c0_29, %c0_30], %53 {strides = array<i32>} : memref<8x16xf32, #tpu.memory_space<vmem>>, vector<8x16xf32>,
    return
  }
}

</mosaic_0001>

<bundles_post_ra>
// kernel: tpu_custom_call.1
= control target key start
LH: loop header
LB: loop body
LE: loop exit
PB: predicated region body
PF: predicated region fallthrough
CT: control target
= control target key end

     0   :  { %16 = vsyncpa [#allocation3], 0  ;;  %s779_s0 = inlined_call_operand.hbm [shape: f32[8,32], index: 0, kind: input, shape index: {}]   ;;  %s780_s1 = inlined_call_operand.hbm [shape: f32[16,32], index: 1, kind: input, shape index: {}]   ;;  %s781_s2 = inlined_call_operand.hbm [shape: f32[16,32], index: 2, kind: input, shape index: {}]   ;;  %s782_s3 = inlined_call_operand.hbm [shape: f32[16,32], index: 3, kind: input, shape index: {}]   ;;  %s783_s4 = inlined_call_operand.vmem [shape: f32[1,16], index: 4, kind: input, shape index: {}]   ;;  %s784_s5 = inlined_call_operand.vmem [shape: f32[1,16], index: 5, kind: input, shape index: {}]   ;;  %s785_s6 = inlined_call_operand.vmem [shape: f32[1,16], index: 6, kind: input, shape index: {}]   ;;  %s786_s7 = inlined_call_operand.hbm [shape: f32[8,16], index: 7, kind: output, shape index: {0}]   ;;  %s787_s8 = inlined_call_operand.hbm [shape: f32[16,32], index: 8, kind: output, shape index: {1}]   ;;  %s788_s9 = inlined_call_operand.hbm [shape: f32[1,16], index: 9, kind: output, shape index: {2}]   ;;  %s789_s10 = inlined_call_operand.hbm [shape: f32[1,1], index: 10, kind: output, shape index: {3}]  }
   0x1   :  { %17 = vsyncpa [#allocation7], 0 }
   0x2   :  { %18 = vsyncpa [#allocation10], 0 }
   0x3   :  { %19 = vsyncpa [#allocation4], 0 }
   0x4   :  { %20 = vsyncpa [#allocation13], 0 }
   0x5   :  { %21 = vsyncpa [#allocation5], 0  ;;  %s569_s13 = smov [#allocation6]   ;;  %s393_s17 = scalar_lea.hbm %s780_s1, 256 }
   0x6   :  { %s37_s14 = sshll.u32 %s569_s13, 4  ;;  %p394_p0 = scmp.ne.s32.totalorder %s780_s1, %s393_s17  ;;  %s38_s14 = int_to_ptr.vmem [resolvable:$true] %s37_s14 }
   0x7   :  { %p397_p1 = scmp.lt.u32.totalorder %s393_s17, %s780_s1 }
   0x9   :  { %p399_p2 = pnand %p397_p1, %p394_p0 }
   0xb   :  { %402 = shalt.err (!%p399_p2)
}
   0xc   :  { %s403_s22 = scalar_lea.vmem %s38_s14, 256  ;;  %p408_p4 = scmp.lt.s32.totalorder %s38_s14, %s38_s14 }
   0xd   :  { %p404_p3 = scmp.ne.s32.totalorder %s38_s14, %s403_s22  ;;  %p409_p5 = scmp.lt.s32.totalorder %s403_s22, %s403_s22 }
   0xf   :  { %p410_p6 = por %p409_p5, %p408_p4 }
  0x11   :  { %p411_p7 = pnand %p410_p6, %p404_p3 }
  0x13   :  { %414 = shalt.err (!%p411_p7)
}
  0x14   :  { %s570_s23 = smov 128   ;;  %s571_s24 = smov 8  }
  0x15   :  { %43 = dma.hbm_to_vmem [thread:$0]  %s780_s1, 256, %s38_s14, [#allocation7], %s570_s23, %s570_s23, %s571_s24  }
  0x16   :  { %s572_s27 = smov [#allocation2]   ;;  %s573_s29 = smov [#allocation8]  }
  0x17   :  { %s28_s28 = sshll.u32 %s572_s27, 4  ;;  %s49_s30 = sshll.u32 %s573_s29, 4  ;;  %s29_s28 = int_to_ptr.vmem [resolvable:$true] %s28_s28  ;;  %s50_s30 = int_to_ptr.vmem [resolvable:$true] %s49_s30 }
  0x18   :  { %s415_s13 = scalar_lea.hbm %s779_s0, 128 }
  0x19   :  { %p416_p8 = scmp.ne.s32.totalorder %s779_s0, %s415_s13  ;;  %p419_p9 = scmp.lt.u32.totalorder %s415_s13, %s779_s0 }
  0x1b   :  { %p421_p10 = pnand %p419_p9, %p416_p8 }
  0x1d   :  { %424 = shalt.err (!%p421_p10)
}
  0x1e   :  { %s425_s1 = scalar_lea.vmem %s29_s28, 128  ;;  %p430_p12 = scmp.lt.s32.totalorder %s29_s28, %s29_s28 }
  0x1f   :  { %p426_p11 = scmp.ne.s32.totalorder %s29_s28, %s425_s1  ;;  %p431_p13 = scmp.lt.s32.totalorder %s425_s1, %s425_s1 }
  0x21   :  { %p432_p0 = por %p431_p13, %p430_p12 }
  0x23   :  { %p433_p1 = pnand %p432_p0, %p426_p11 }
  0x25   :  { %436 = shalt.err (!%p433_p1)
}
  0x26   :  { %31 = dma.hbm_to_vmem [thread:$0]  %s779_s0, 128, %s29_s28, [#allocation3]  }
  0x27   :  { %s437_s22 = scalar_lea.hbm %s781_s2, 256 }
  0x28   :  { %p438_p2 = scmp.ne.s32.totalorder %s781_s2, %s437_s22  ;;  %p441_p3 = scmp.lt.u32.totalorder %s437_s22, %s781_s2 }
  0x2a   :  { %p443_p4 = pnand %p441_p3, %p438_p2 }
  0x2c   :  { %446 = shalt.err (!%p443_p4)
}
  0x2d   :  { %s447_s11 = scalar_lea.vmem %s50_s30, 256  ;;  %p452_p6 = scmp.lt.s32.totalorder %s50_s30, %s50_s30 }
  0x2e   :  { %p448_p5 = scmp.ne.s32.totalorder %s50_s30, %s447_s11  ;;  %p453_p7 = scmp.lt.s32.totalorder %s447_s11, %s447_s11 }
  0x30   :  { %p454_p8 = por %p453_p7, %p452_p6 }
  0x32   :  { %p455_p9 = pnand %p454_p8, %p448_p5 }
  0x34   :  { %458 = shalt.err (!%p455_p9)
}
  0x35   :  { %55 = dma.hbm_to_vmem [thread:$0]  %s781_s2, 256, %s50_s30, [#allocation7], %s570_s23, %s570_s23, %s571_s24  }
  0x36   :  { %s574_s12 = smov [#allocation9]   ;;  %s459_s17 = scalar_lea.hbm %s782_s3, 256 }
  0x37   :  { %s61_s13 = sshll.u32 %s574_s12, 4  ;;  %p460_p10 = scmp.ne.s32.totalorder %s782_s3, %s459_s17  ;;  %s62_s13 = int_to_ptr.vmem [resolvable:$true] %s61_s13 }
  0x38   :  { %p463_p11 = scmp.lt.u32.totalorder %s459_s17, %s782_s3 }
  0x3a   :  { %p465_p12 = pnand %p463_p11, %p460_p10 }
  0x3c   :  { %468 = shalt.err (!%p465_p12)
}
  0x3d   :  { %s469_s20 = scalar_lea.vmem %s62_s13, 256  ;;  %p474_p0 = scmp.lt.s32.totalorder %s62_s13, %s62_s13 }
  0x3e   :  { %p470_p13 = scmp.ne.s32.totalorder %s62_s13, %s469_s20  ;;  %p475_p1 = scmp.lt.s32.totalorder %s469_s20, %s469_s20 }
  0x40   :  { %p476_p2 = por %p475_p1, %p474_p0 }
  0x42   :  { %p477_p3 = pnand %p476_p2, %p470_p13 }
  0x44   :  { %480 = shalt.err (!%p477_p3)
}
  0x45   :  { %67 = dma.hbm_to_vmem [thread:$0]  %s782_s3, 256, %s62_s13, [#allocation10], %s570_s23, %s570_s23, %s571_s24  }
  0x46   :  { %557 = dma.done.wait [#allocation3], 128  }
  0x47   :  { %558 = vsyncadd [#allocation3], 4294967168 }
  0x48   :  { %559 = dma.done.wait [#allocation7], 512  }
  0x49   :  { %560 = vsyncadd [#allocation7], 4294966784 }
  0x4a   :  { %561 = dma.done.wait [#allocation10], 256  }
  0x4b   :  { %562 = vsyncadd [#allocation10], 4294967040  ;;  %v575_v0 = vmov 0.0|0.0   ;;  %vm576_vm0 = vmmov 0   ;;  %v577_v1 = vmov 0.0   ;;  %v92_v2 = vld [vmem:[#allocation8] sm:$0xff] }
  0x4c   :  { %354 = vmatprep.subr.bf16.mxu0 %v575_v0  ;;  %351 = vmatprep.mubr.msk.f32.mxu0 %vm576_vm0, %v577_v1  ;;  %v93_v3 = vld [vmem:[#allocation8 + $0x8] sm:$0xff]  ;;  %v96_v4 = vmin.f32 %v92_v2, 20.0  ;;  %vm94_vm2 = vcmp.gt.f32.partialorder %v92_v2, 20.0  ;;  %v89_v35 = vld [vmem:[#allocation9] sm:$0xff]  ;;  %v90_v38 = vld [vmem:[#allocation9 + $0x8] sm:$0xff]  ;;  %vm143_vm7 = vcmask 261120  }
  0x4d   :  { %v97_v5 = vmin.f32 %v93_v3, 20.0  ;;  %v122_v6 = vld [vmem:[%s784_s5] sm:$0x1]  ;;  %vm95_vm4 = vcmp.gt.f32.partialorder %v93_v3, 20.0  ;;  %v86_v41 = vld [vmem:[#allocation6] sm:$0xff]  ;;  %v87_v44 = vld [vmem:[#allocation6 + $0x8] sm:$0xff] }
  0x4e   :  { %v98_v7 = vmul.f32 1.442695, %v96_v4  ;;  %v124_v9 = vmin.f32 %v122_v6, 20.0  ;;  %vm123_vm6 = vcmp.gt.f32.partialorder %v122_v6, 20.0  ;;  %vm356_vm8 = vmpackc.low %vm143_vm7, %vm143_vm7  ;;  %v91_v52 = vld [vmem:[%s785_s6] sm:$0x1] }
  0x4f   :  { %v100_v8 = vmul.f32 1.442695, %v97_v5  ;;  %v148_v54 = vmul.f32 -0.5, %v89_v35  ;;  %v149_v55 = vmul.f32 -0.5, %v90_v38  ;;  %v160_v56 = vmul.f32 -0.5, %v91_v52  ;;  %v191_v61 = vld [vmem:[#allocation2] sm:$0xff] }
  0x50   :  { %375 = vpow2.f32 %v98_v7  ;;  %v125_v10 = vmul.f32 1.442695, %v124_v9  ;;  %vm146_vm9 = vcmask 122880   ;;  %s578_s26 = smov [#allocation12]  }
  0x51   :  { %377 = vpow2.f32 %v100_v8  ;;  %v150_v57 = vmul.f32 %v148_v54, %v89_v35  ;;  %v151_v59 = vmul.f32 %v149_v55, %v90_v38  ;;  %v161_v63 = vmul.f32 %v160_v56, %v91_v52  ;;  %s294_s27 = sshll.u32 %s578_s26, 4  ;;  %s295_s27 = int_to_ptr.vmem [resolvable:$true] %s294_s27 }
  0x52   :  { %379 = vpow2.f32 %v125_v10  ;;  %s481_s29 = scalar_lea.vmem %s295_s27, 256  ;;  %p486_p5 = scmp.lt.s32.totalorder %s295_s27, %s295_s27 }
  0x53   :  { %p482_p4 = scmp.ne.s32.totalorder %s295_s27, %s481_s29  ;;  %p487_p6 = scmp.lt.s32.totalorder %s481_s29, %s481_s29 }
  0x55   :  { %p488_p7 = por %p487_p6, %p486_p5 }
  0x57   :  { %p489_p8 = pnand %p488_p7, %p482_p4 }
  0x5a   :  { %v376_v11 = vpop.eup %375 }
  0x5b   :  { %v378_v12 = vpop.eup %377  ;;  %v102_v13 = vadd.f32 1.0, %v376_v11  ;;  %v105_v17 = vmul.f32 -0.5, %v376_v11  ;;  %v108_v21 = vand.u32 2147483647, %v376_v11 }
  0x5c   :  { %v380_v14 = vpop.eup %379  ;;  %v111_v15 = vadd.f32 1.0, %v378_v12  ;;  %v114_v18 = vmul.f32 -0.5, %v378_v12  ;;  %v117_v23 = vand.u32 2147483647, %v378_v12 }
  0x5d   :  { %381 = vlog2.f32 %v102_v13  ;;  %v127_v16 = vadd.f32 1.0, %v380_v14  ;;  %v130_v19 = vmul.f32 -0.5, %v380_v14  ;;  %v106_v20 = vadd.f32 1.0, %v105_v17 }
  0x5e   :  { %383 = vlog2.f32 %v111_v15  ;;  %v115_v22 = vadd.f32 1.0, %v114_v18  ;;  %v133_v25 = vand.u32 2147483647, %v380_v14  ;;  %vm697_vm1 = vcmp.lt.f32.partialorder %v108_v21, 0.0004427343 }
  0x5f   :  { %385 = vlog2.f32 %v127_v16  ;;  %v131_v24 = vadd.f32 1.0, %v130_v19  ;;  %v107_v26 = vmul.f32 %v376_v11, %v106_v20  ;;  %vm701_vm3 = vcmp.lt.f32.partialorder %v117_v23, 0.0004427343 }
  0x60   :  { %v116_v29 = vmul.f32 %v378_v12, %v115_v22  ;;  %vm705_vm5 = vcmp.lt.f32.partialorder %v133_v25, 0.0004427343 }
  0x61   :  { %v132_v33 = vmul.f32 %v380_v14, %v131_v24  ;;  %v88_v14 = vld [vmem:[%s783_s4] sm:$0x1] }
  0x67   :  { %v382_v27 = vpop.eup %381 }
  0x68   :  { %v384_v30 = vpop.eup %383  ;;  %v104_v31 = vmul.f32 0.6931472, %v382_v27 }
  0x69   :  { %v386_v34 = vpop.eup %385  ;;  %v113_v36 = vmul.f32 0.6931472, %v384_v30 }
  0x6a   :  { %v110_v39 = vsel %vm697_vm1, %v107_v26, %v104_v31  ;;  %v129_v40 = vmul.f32 0.6931472, %v386_v34 }
  0x6b   :  { %v119_v42 = vsel %vm701_vm3, %v116_v29, %v113_v36  ;;  %v120_v43 = vsel %vm94_vm2, %v92_v2, %v110_v39 }
  0x6c   :  { %v121_v45 = vsel %vm95_vm4, %v93_v3, %v119_v42  ;;  %v137_v46 = vmul.f32 %v120_v43, %v89_v35  ;;  %387 = vlog2.f32 %v120_v43  ;;  %v135_v47 = vsel %vm705_vm5, %v132_v33, %v129_v40 }
  0x6d   :  { %v138_v48 = vmul.f32 %v121_v45, %v90_v38  ;;  %389 = vlog2.f32 %v121_v45  ;;  %v136_v49 = vsel %vm123_vm6, %v122_v6, %v135_v47 }
  0x6e   :  { %v139_v50 = vadd.f32 %v137_v46, %v86_v41  ;;  %391 = vlog2.f32 %v136_v49  ;;  %v141_v13 = vmul.f32 %v136_v49, %v91_v52 }
  0x6f   :  { %v140_v51 = vadd.f32 %v138_v48, %v87_v44 }
  0x70   :  { %144 = vst.msk [vmem:[#allocation12] sm:$0xff] %vm143_vm7, %v139_v50  ;;  %v142_v15 = vadd.f32 %v141_v13, %v88_v14 }
  0x71   :  { %v355_v53 = vpack.c.bf16 %v140_v51, %v139_v50  ;;  %145 = vst.msk [vmem:[#allocation12 + $0x8] sm:$0xff] %vm143_vm7, %v140_v51 }
  0x72   :  { %147 = vst.msk [vmem:[#allocation14] sm:$0x1] %vm146_vm9, %v142_v15 }
  0x73   :  { %357 = vmatpush3.bf16.xpose.msk.msra.mxu0 %vm356_vm8, %v355_v53 }
  0x76   :  { %v388_v58 = vpop.eup %387 }
  0x77   :  { %v390_v60 = vpop.eup %389  ;;  %v153_v62 = vmul.f32 0.6931472, %v388_v58 }
  0x78   :  { %v392_v0 = vpop.eup %391  ;;  %v155_v1 = vmul.f32 0.6931472, %v390_v60 }
  0x79   :  { %v156_v2 = vsub.f32 %v150_v57, %v153_v62  ;;  %v163_v3 = vmul.f32 0.6931472, %v392_v0 }
  0x7a   :  { %352 = vmatmul.mubr.msk.f32.vlgmr.msra.gmra.mrb[0].mxu0 %vm143_vm7, %v191_v61  ;;  %v157_v4 = vsub.f32 %v151_v59, %v155_v1 }
  0x7b   :  { %v338_v5 = vadd.f32 -0.9189385, %v156_v2  ;;  %v164_v6 = vsub.f32 %v161_v63, %v163_v3 }
  0x7c   :  { %v339_v7 = vadd.f32 -0.9189385, %v157_v4 }
  0x7d   :  { %v166_v8 = vsel %vm143_vm7, %v338_v5, 0.0  ;;  %v340_v10 = vadd.f32 -0.9189385, %v164_v6 }
  0x7e   :  { %v167_v9 = vsel %vm143_vm7, %v339_v7, 0.0 }
  0x7f   :  { %v168_v11 = vadd.f32 %v167_v9, %v166_v8  ;;  %v178_v12 = vsel %vm146_vm9, %v340_v10, 0.0 }
  0x81   :  { %169 = vadd.xlane.f32.xlu0 %v168_v11 }
  0x85   :  { %179 = vadd.xlane.f32.xlu0 %v178_v12 }
  0x86   :  { %492 = shalt.err (!%p489_p8)
}
  0x87   :  { %s493_s28 = scalar_lea.hbm %s787_s8, 256 }
  0x88   :  { %p494_p9 = scmp.ne.s32.totalorder %s787_s8, %s493_s28  ;;  %p497_p10 = scmp.lt.u32.totalorder %s493_s28, %s787_s8 }
  0x8a   :  { %p499_p11 = pnand %p497_p10, %p494_p9 }
  0x8c   :  { %502 = shalt.err (!%p499_p11)
}
  0x8d   :  { %300 = dma.vmem_to_hbm [thread:$0]  %s295_s27, 256, %s787_s8, [#allocation13], %s570_s23, %s570_s23, %s571_s24  }
  0x8e   :  { %s579_s18 = smov [#allocation14]  }
  0x8f   :  { %s307_s1 = sshll.u32 %s579_s18, 4  ;;  %s308_s1 = int_to_ptr.vmem [resolvable:$true] %s307_s1 }
  0x90   :  { %s503_s14 = scalar_lea.vmem %s308_s1, 16  ;;  %s507_s19 = scalar_lea.vmem %s308_s1, 32 }
  0x91   :  { %p504_p12 = scmp.ne.s32.totalorder %s308_s1, %s503_s14  ;;  %p508_p13 = scmp.lt.s32.totalorder %s308_s1, %s308_s1 }
  0x92   :  { %p509_p0 = scmp.lt.s32.totalorder %s507_s19, %s503_s14 }
  0x94   :  { %p510_p1 = por %p509_p0, %p508_p13 }
  0x96   :  { %p511_p2 = pnand %p510_p1, %p504_p12 }
  0x98   :  { %514 = shalt.err (!%p511_p2)
}
  0x99   :  { %s515_s30 = scalar_lea.hbm %s788_s9, 16 }
  0x9a   :  { %p516_p3 = scmp.ne.s32.totalorder %s788_s9, %s515_s30  ;;  %p519_p4 = scmp.lt.u32.totalorder %s515_s30, %s788_s9 }
  0x9c   :  { %p521_p5 = pnand %p519_p4, %p516_p3 }
  0x9e   :  { %524 = shalt.err (!%p521_p5)
}
  0x9f   :  { %310 = dma.vmem_to_hbm [thread:$0]  %s308_s1, 16, %s788_s9, [#allocation13]   ;;  %v193_v30 = vlaneseq  ;;  %vm277_vm10 = vcmask 130048  }
  0xa0   :  { %s580_s9 = smov [#allocation11]  }
  0xa1   :  { %v194_v31 = vshrl.u32 %v193_v30, 7  ;;  %s285_s5 = sshll.u32 %s580_s9, 4  ;;  %s286_s5 = int_to_ptr.vmem [resolvable:$true] %s285_s5 }
  0xa2   :  { %s525_s27 = scalar_lea.vmem %s286_s5, 128  ;;  %p530_p7 = scmp.lt.s32.totalorder %s286_s5, %s286_s5 }
  0xa3   :  { %v195_v32 = vsub.s32 0, %v194_v31  ;;  %p526_p6 = scmp.ne.s32.totalorder %s286_s5, %s525_s27  ;;  %p531_p8 = scmp.lt.s32.totalorder %s525_s27, %s525_s27 }
  0xa5   :  { %v196_v33 = vrot.slane %v142_v15, %v195_v32  ;;  %p532_p9 = por %p531_p8, %p530_p7 }
  0xa7   :  { %p533_p10 = pnand %p532_p9, %p526_p6 }
 0x10e   :  { %v170_v16 = vpop.xlane.xlu0 %169 }
 0x10f   :  { %v171_v17 = vrot.slane %v170_v16, 4 }
 0x111   :  { %v172_v18 = vadd.f32 %v171_v17, %v170_v16 }
 0x112   :  { %v180_v19 = vpop.xlane.xlu0 %179 }
 0x113   :  { %v173_v20 = vrot.slane %v172_v18, 2  ;;  %v181_v21 = vrot.slane %v180_v19, 4 }
 0x115   :  { %v182_v22 = vadd.f32 %v181_v21, %v180_v19  ;;  %v174_v23 = vadd.f32 %v173_v20, %v172_v18 }
 0x117   :  { %v183_v24 = vrot.slane %v182_v22, 2  ;;  %v175_v25 = vrot.slane %v174_v23, 1 }
 0x119   :  { %v184_v26 = vadd.f32 %v183_v24, %v182_v22  ;;  %v176_v27 = vadd.f32 %v175_v25, %v174_v23 }
 0x11b   :  { %358 = vpush %v176_v27  ;;  %v185_v28 = vrot.slane %v184_v26, 1 }
 0x11d   :  { %v186_v29 = vadd.f32 %v185_v28, %v184_v26 }
 0x11f   :  { %360 = vpush %v186_v29 }
 0x14c   :  { %s359_s6 = spop %358 }
 0x14d   :  { %v273_v34 = vpop.f32.mrb[0].mxu0 }
 0x14e   :  { %v274_v35 = vadd.f32 %v273_v34, %v196_v33  ;;  %v353_v36 = vpop.f32.mrb[1].mxu0 }
 0x150   :  { %s361_s25 = spop %360  ;;  %278 = vst.msk [vmem:[#allocation11] sm:$0xff] %vm277_vm10, %v274_v35 }
 0x151   :  { %s188_s26 = sadd.f32 %s361_s25, %s359_s6 }
 0x152   :  { %536 = shalt.err (!%p533_p10)
}
 0x153   :  { %s537_s0 = scalar_lea.hbm %s786_s7, 128 }
 0x154   :  { %p538_p11 = scmp.ne.s32.totalorder %s786_s7, %s537_s0  ;;  %p541_p12 = scmp.lt.u32.totalorder %s537_s0, %s786_s7 }
 0x156   :  { %p543_p13 = pnand %p541_p12, %p538_p11 }
 0x158   :  { %546 = shalt.err (!%p543_p13)
}
 0x159   :  { %288 = dma.vmem_to_hbm [thread:$0]  %s286_s5, 128, %s786_s7, [#allocation4]  }
 0x15a   :  { %190 = sst [smem:[#allocation15]] %s188_s26  ;;  %s547_s1 = scalar_lea.hbm %s789_s10, 16 }
 0x15b   :  { %p548_p0 = scmp.ne.s32.totalorder %s789_s10, %s547_s1  ;;  %p551_p1 = scmp.lt.u32.totalorder %s547_s1, %s789_s10 }
 0x15d   :  { %p553_p2 = pnand %p551_p1, %p548_p0 }
 0x15f   :  { %556 = shalt.err (!%p553_p2)
}
 0x160   :  { %s581_s30 = smov [#allocation15]  }
 0x161   :  { %318 = dma.smem_to_hbm %s581_s30, 16, %s789_s10, [#allocation5]  }
 0x162   :  { %563 = dma.done.wait [#allocation4], 128  }
 0x163   :  { %564 = vsyncadd [#allocation4], 4294967168 }
 0x164   :  { %565 = dma.done.wait [#allocation13], 272  }
 0x165   :  { %566 = vsyncadd [#allocation13], 4294967024 }
 0x166   :  { %567 = dma.done.wait [#allocation5], 16  }
 0x167   :  { %568 = vsyncadd [#allocation5], 4294967280 }
 0x168   :  { %331 = sfence }
 0x169   :  { %332 = vsyncpa [#allocation3], 1 }
 0x16a   :  { %333 = vsyncpa [#allocation7], 1 }
 0x16b   :  { %334 = vsyncpa [#allocation10], 1 }
 0x16c   :  { %335 = vsyncpa [#allocation4], 1 }
 0x16d   :  { %336 = vsyncpa [#allocation13], 1 }
 0x16e   :  { %337 = vsyncpa [#allocation5], 1 }

</bundles_post_ra>
